<compile_context>
chip_gen: v7x
topology: tpu7x:2x2x1
jax: 0.10.0
libtpu: 0.0.40
codegen_flags: <defaults>
</compile_context>

<pallas_src>
import functools

import jax
import jax.numpy as jnp
from jax.experimental import pallas as pl
from jax.experimental.pallas import tpu as pltpu


def _round_up(x, m):
    return ((x + m - 1) // m) * m


@functools.lru_cache(maxsize=1)
def _tpu_tile_config():
    """Per-generation tile sizes / VMEM limits with conservative fallbacks."""
    vmem_bytes = 64 * 1024 * 1024
    kind = ""
    try:
        kind = jax.devices()[0].device_kind.lower()
    except Exception:
        pass
    try:
        vmem_bytes = int(pltpu.get_tpu_info().vmem_capacity_bytes)
    except Exception:
        pass
    if vmem_bytes >= 100 * 1024 * 1024:
        # v5e / v6e: 128 MiB VMEM, single TensorCore -> big tiles; deeper buffering on v5e.
        is_v5e = ("v5 lite" in kind) or ("v5e" in kind) or ("v5litepod" in kind)
        return dict(tile_m=512, tile_k=1024,
                    vmem_limit=100 * 1024 * 1024,
                    stream_buffers=3 if is_v5e else 2,
                    split_dst=False)
    # v7x-class: 64 MiB VMEM but two TensorCores -> smaller tiles, >= 2 dst tiles.
    return dict(tile_m=256, tile_k=512,
                vmem_limit=48 * 1024 * 1024,
                stream_buffers=2,
                split_dst=True)


def _spec(shape, index_map, buffers=2):
    """BlockSpec with optional deeper pipelining (v5e latency hiding)."""
    if buffers > 2:
        try:
            return pl.BlockSpec(shape, index_map, pipeline_mode=pl.Buffered(buffers))
        except TypeError:  # BlockSpec without pipeline_mode support -> default 2-deep
            pass
    return pl.BlockSpec(shape, index_map)


# ----------------------------------------------------------------------------------------
# Prologue: HW = H_src @ W_neigh, computed once per layer (bf16 output, f32 MXU accum).
# ----------------------------------------------------------------------------------------
def _matmul_bf16_kernel(x_ref, w_ref, o_ref):
    o_ref[...] = jnp.dot(x_ref[...], w_ref[...],
                         preferred_element_type=jnp.float32).astype(o_ref.dtype)


def _precompute_hw(h_p, w_p, vmem_limit):
    rows, f_in_p = h_p.shape
    f_out_p = w_p.shape[1]
    tmw = 512 if rows % 512 == 0 else (256 if rows % 256 == 0 else 128)
    return pl.pallas_call(
        _matmul_bf16_kernel,
        out_shape=jax.ShapeDtypeStruct((rows, f_out_p), jnp.bfloat16),
        grid_spec=pltpu.PrefetchScalarGridSpec(
            num_scalar_prefetch=0,
            grid=(rows // tmw,),
            in_specs=[pl.BlockSpec((tmw, f_in_p), lambda i: (i, 0)),
                      pl.BlockSpec((f_in_p, f_out_p), lambda i: (0, 0))],
            out_specs=pl.BlockSpec((tmw, f_out_p), lambda i: (i, 0)),
        ),
        compiler_params=pltpu.CompilerParams(
            dimension_semantics=("parallel",),
            vmem_limit_bytes=vmem_limit),
    )(h_p, w_p)


# ----------------------------------------------------------------------------------------
# Main layer kernel: acc(i) = H_dst(i) @ W_self + sum_k A(i,k) @ HW(k);  +bias, ReLU, store.
# ----------------------------------------------------------------------------------------
def _sage_layer_kernel(a_ref, hw_ref, hdst_ref, wself_ref, b_ref, out_ref, acc_ref,
                       *, apply_relu: bool):
    """Tiled over (dst rows "i" [parallel], src reduction "k" [arbitrary]).

    a_ref     : [tm, tk]           bf16  row-normalized adjacency tile (dominant HBM stream)
    hw_ref    : [tk, F_out_p]      bf16  precomputed H_src @ W_neigh tile
    hdst_ref  : [tm, F_in_p]       bf16  dst-row view of the same h_src array (once per i)
    wself_ref : [F_in_p, F_out_p]  bf16  resident across the grid
    b_ref     : [1, F_out_p]       f32   resident
    out_ref   : [tm, F_out_p]      bf16 (hidden layers) / f32 (final layer)
    acc_ref   : [tm, F_out_p]      f32 VMEM accumulator
    """
    k = pl.program_id(1)

    # Self term folded into the accumulator init: no zero-fill, off the last heavy step.
    @pl.when(k == 0)
    def _init():
        acc_ref[...] = jnp.dot(hdst_ref[...], wself_ref[...],
                               preferred_element_type=jnp.float32)

    acc_ref[...] += jnp.dot(a_ref[...], hw_ref[...],
                            preferred_element_type=jnp.float32)

    @pl.when(k == pl.num_programs(1) - 1)
    def _finalize():
        out = acc_ref[...] + b_ref[...]
        if apply_relu:
            out = jnp.maximum(out, 0.0)
        out_ref[...] = out.astype(out_ref.dtype)


def sage_conv_layer(A, h_src, w_self, w_neigh, b, *, apply_relu, final,
                    compute_dtype=jnp.bfloat16):
    """One fused SAGEConv('mean') layer.

    A      : [N_dst, N_src]  row-normalized (edge-weighted) dense adjacency (ideally bf16)
    h_src  : [N_src, F_in] or [N_src, F_in_p] (pre-padded bf16 from the previous layer)
    w_self : [F_in, F_out],  w_neigh : [F_in, F_out],  b : [F_out]

    Hidden layers return bf16 [N_dst, F_out_p] (feature axis kept 128-lane padded for the
    next layer); the final layer returns f32 [N_dst, F_out].
    """
    cfg = _tpu_tile_config()
    n_dst, n_src = A.shape
    f_in, f_out = w_self.shape
    f_in_p = _round_up(f_in, 128)
    f_out_p = _round_up(f_out, 128)
    assert h_src.shape[0] == n_src and h_src.shape[1] in (f_in, f_in_p)

    # --- tile choice -------------------------------------------------------------------
    tm = min(cfg["tile_m"], _round_up(n_dst, 8))
    if cfg["split_dst"] and n_dst > 16:
        tm = min(tm, _round_up(-(-n_dst // 2), 8))   # >= 2 dst tiles: keep both v7x TCs busy
    n_dst_p = _round_up(n_dst, tm)
    tk = min(cfg["tile_k"], _round_up(n_src, 128))
    # h_dst is read as rows [i*tm, (i+1)*tm) of the padded h_src, so it must cover n_dst_p.
    n_src_p = _round_up(max(n_src, n_dst_p), tk)

    # --- pad / cast only when actually needed (A stays bf16, no extra HBM pass) ---------
    def pad2(x, rows, cols, dtype):
        if x.dtype != dtype:
            x = x.astype(dtype)
        pr, pc = rows - x.shape[0], cols - x.shape[1]
        if pr or pc:
            x = jnp.pad(x, ((0, pr), (0, pc)))
        return x

    A_p = pad2(A, n_dst_p, n_src_p, compute_dtype)
    h_p = pad2(h_src, n_src_p, f_in_p, compute_dtype)
    ws_p = pad2(w_self, f_in_p, f_out_p, compute_dtype)
    wn_p = pad2(w_neigh, f_in_p, f_out_p, compute_dtype)
    b_p = pad2(b.reshape(1, -1), 1, f_out_p, jnp.float32)

    # --- prologue: HW = H_src @ W_neigh once per layer -----------------------------------
    hw_p = _precompute_hw(h_p, wn_p, cfg["vmem_limit"])

    out_dtype = jnp.float32 if final else jnp.bfloat16
    grid = (n_dst_p // tm, n_src_p // tk)
    kernel = functools.partial(_sage_layer_kernel, apply_relu=apply_relu)

    out_p = pl.pallas_call(
        kernel,
        out_shape=jax.ShapeDtypeStruct((n_dst_p, f_out_p), out_dtype),
        grid_spec=pltpu.PrefetchScalarGridSpec(
            num_scalar_prefetch=0,
            grid=grid,
            in_specs=[
                _spec((tm, tk), lambda i, k: (i, k), cfg["stream_buffers"]),       # A
                _spec((tk, f_out_p), lambda i, k: (k, 0), cfg["stream_buffers"]),  # HW
                pl.BlockSpec((tm, f_in_p), lambda i, k: (i, 0)),    # h_dst view of h_src
                pl.BlockSpec((f_in_p, f_out_p), lambda i, k: (0, 0)),  # W_self (resident)
                pl.BlockSpec((1, f_out_p), lambda i, k: (0, 0)),       # bias (resident)
            ],
            out_specs=pl.BlockSpec((tm, f_out_p), lambda i, k: (i, 0)),
            scratch_shapes=[pltpu.VMEM((tm, f_out_p), jnp.float32)],
        ),
        compiler_params=pltpu.CompilerParams(
            dimension_semantics=("parallel", "arbitrary"),
            vmem_limit_bytes=cfg["vmem_limit"]),
    )(A_p, hw_p, h_p, ws_p, b_p)

    if final:
        return out_p[:n_dst, :f_out]
    return out_p[:n_dst]   # bf16; feature axis kept 128-lane padded for the next layer


@jax.jit
def sage_forward(params, blocks, x):
    """blocks: list of dense row-normalized (edge-weighted) adjacencies [N_dst_l, N_src_l]."""
    h = x
    n_layers = len(params)
    for l, (A, (w_self, w_neigh, b)) in enumerate(zip(blocks, params)):
        last = (l == n_layers - 1)
        h = sage_conv_layer(A, h, w_self, w_neigh, b, apply_relu=not last, final=last)
        # dropout: identity in eval / deterministic run
    return h


class SAGEPallas:
    """Mirror of the PyTorch SAGE module (forward pass only)."""

    def __init__(self, in_feats, n_hidden, n_classes, n_layers, key):
        self.n_layers = n_layers
        dims = []
        if n_layers > 1:
            dims.append((in_feats, n_hidden))
            for _ in range(1, n_layers - 1):
                dims.append((n_hidden, n_hidden))
            dims.append((n_hidden, n_classes))
        else:
            dims.append((in_feats, n_classes))

        self.params = []
        for (fi, fo) in dims:
            key, k1, k2, k3 = jax.random.split(key, 4)
            scale = 1.0 / jnp.sqrt(jnp.float32(fi))
            w_self = jax.random.uniform(k1, (fi, fo), jnp.float32, -scale, scale)
            w_neigh = jax.random.uniform(k2, (fi, fo), jnp.float32, -scale, scale)
            bias = jax.random.uniform(k3, (fo,), jnp.float32, -scale, scale)
            self.params.append((w_self, w_neigh, bias))

    def forward(self, blocks, x):
        return sage_forward(self.params, blocks, x)


def make_block(key, n_dst, n_src, p=0.3):
    """Dense edge-weighted block, mean-normalized: A[v,u] = w_vu / deg(v), stored in bf16."""
    k1, k2 = jax.random.split(key)
    adj = (jax.random.uniform(k1, (n_dst, n_src)) < p).astype(jnp.float32)
    # guarantee every dst node has at least one in-neighbor (itself)
    adj = adj.at[jnp.arange(n_dst), jnp.arange(n_dst)].set(1.0)
    ew = jax.random.uniform(k2, (n_dst, n_src), jnp.float32, 0.5, 1.5)
    weighted = adj * ew
    deg = jnp.sum(adj, axis=1, keepdims=True)
    # A is the dominant HBM stream; store it in bf16 upstream so the kernel never pays
    # an extra cast/materialization pass over it.
    return (weighted / deg).astype(jnp.bfloat16)


def reference_forward(model, blocks, x):
    """Plain-JAX f32 reference for verification."""
    h = x.astype(jnp.float32)
    for l, (A, (w_self, w_neigh, b)) in enumerate(zip(blocks, model.params)):
        A32 = A.astype(jnp.float32)
        h_dst = h[:A.shape[0]]
        out = h_dst @ w_self + (A32 @ h) @ w_neigh + b
        if l != len(model.params) - 1:
            out = jnp.maximum(out, 0.0)
        h = out
    return h


if __name__ == "__main__":
    key = jax.random.PRNGKey(0)
    k_model, k_x, k_b0, k_b1 = jax.random.split(key, 4)

    in_feats, n_hidden, n_classes, n_layers = 32, 32, 16, 2
    n_src0, n_dst0 = 64, 32     # layer-0 block: 64 src nodes -> 32 dst nodes
    n_src1, n_dst1 = 32, 16     # layer-1 block: 32 src nodes -> 16 dst nodes

    model = SAGEPallas(in_feats, n_hidden, n_classes, n_layers, k_model)

    x = jax.random.normal(k_x, (n_src0, in_feats), jnp.float32)
    blocks = [make_block(k_b0, n_dst0, n_src0), make_block(k_b1, n_dst1, n_src1)]

    out = model.forward(blocks, x)
    out = jax.block_until_ready(out)

    ref = reference_forward(model, blocks, x)
    assert out.shape == (n_dst1, n_classes), out.shape
    # bf16 MXU operands / bf16 hidden activations with f32 accumulation -> loose tolerance
    assert jnp.allclose(out, ref, atol=5e-2, rtol=5e-2), "mismatch vs reference"

    print("KERNEL_OK")
</pallas_src>

<mosaic_0001>
module attributes {stable_mosaic.version = 11 : i64} {
  func.func @_matmul_bf16_kernel(%arg0: i32, %arg1: memref<128x128xbf16, #tpu.memory_space<vmem>>, %arg2: memref<128x128xbf16, #tpu.memory_space<vmem>>, %arg3: memref<128x128xbf16, #tpu.memory_space<vmem>>) attributes {dimension_semantics = [#tpu.dimension_semantics<parallel>], iteration_bounds = array<i64: 1>, scalar_prefetch = 0 : i64, scratch_operands = 0 : i64, tpu.core_type = #tpu.core_type<tc>, window_params = [{transform_indices = @transform_0, window_bounds = array<i64: 128, 128>}, {pipeline_mode = #tpu.pipeline_mode<synchronous>, transform_indices = @transform_1, window_bounds = array<i64: 128, 128>}, {transform_indices = @transform_2, window_bounds = array<i64: 128, 128>}]} {
    %c0 = arith.constant 0 : index
    %c0_0 = arith.constant 0 : index
    %0 = vector.load %arg1[%c0, %c0_0] : memref<128x128xbf16, #tpu.memory_space<vmem>>, vector<128x128xbf16>
    %c0_1 = arith.constant 0 : index
    %c0_2 = arith.constant 0 : index
    %1 = vector.load %arg2[%c0_1, %c0_2] : memref<128x128xbf16, #tpu.memory_space<vmem>>, vector<128x128xbf16>
    %cst = arith.constant dense<0.000000e+00> : vector<128x128xf32>
    %2 = tpu.matmul %0, %1, %cst {dimension_numbers = #tpu.dot_dimension_numbers<[1], [0], [0], [1], [0, 0, 1, 1], [], []>} : vector<128x128xbf16>, vector<128x128xbf16>, vector<128x128xf32> -> vector<128x128xf32>
    %3 = arith.truncf %2 : vector<128x128xf32> to vector<128x128xbf16>
    %c0_3 = arith.constant 0 : index
    %c0_4 = arith.constant 0 : index
    %4 = vector.load %arg3[%c0_3, %c0_4] : memref<128x128xbf16, #tpu.memory_space<vmem>>, vector<128x128xbf16>
    tpu.vector_store %arg3[%c0_3, %c0_4], %3 {strides = array<i32>} : memref<128x128xbf16, #tpu.memory_space<vmem>>, vector<128x128xbf16>,
    return
  }
  func.func @transform_0(%arg0: i32) -> (i32, i32) {
    %c0_i32 = arith.constant 0 : i32
    %c0_i32_0 = arith.constant 0 : i32
    return %arg0, %c0_i32 : i32, i32
  }
  func.func @transform_1(%arg0: i32) -> (i32, i32) {
    %c0_i32 = arith.constant 0 : i32
    %c0_i32_0 = arith.constant 0 : i32
    %c0_i32_1 = arith.constant 0 : i32
    return %c0_i32, %c0_i32_0 : i32, i32
  }
  func.func @transform_2(%arg0: i32) -> (i32, i32) {
    %c0_i32 = arith.constant 0 : i32
    %c0_i32_0 = arith.constant 0 : i32
    return %arg0, %c0_i32 : i32, i32
  }
}

module attributes {stable_mosaic.version = 11 : i64} {
  func.func @_sage_layer_kernel(%arg0: i32, %arg1: i32, %arg2: memref<16x128xbf16, #tpu.memory_space<vmem>>, %arg3: memref<128x128xbf16, #tpu.memory_space<vmem>>, %arg4: memref<16x128xbf16, #tpu.memory_space<vmem>>, %arg5: memref<128x128xbf16, #tpu.memory_space<vmem>>, %arg6: memref<1x128xf32, #tpu.memory_space<vmem>>, %arg7: memref<16x128xbf16, #tpu.memory_space<vmem>>, %arg8: memref<16x128xf32, #tpu.memory_space<vmem>>) attributes {dimension_semantics = [#tpu.dimension_semantics<parallel>, #tpu.dimension_semantics<arbitrary>], iteration_bounds = array<i64: 2, 1>, scalar_prefetch = 0 : i64, scratch_operands = 1 : i64, tpu.core_type = #tpu.core_type<tc>, window_params = [{transform_indices = @transform_0, window_bounds = array<i64: 16, 128>}, {transform_indices = @transform_1, window_bounds = array<i64: 128, 128>}, {transform_indices = @transform_2, window_bounds = array<i64: 16, 128>}, {pipeline_mode = #tpu.pipeline_mode<synchronous>, transform_indices = @transform_3, window_bounds = array<i64: 128, 128>}, {pipeline_mode = #tpu.pipeline_mode<synchronous>, transform_indices = @transform_4, window_bounds = array<i64: 1, 128>}, {transform_indices = @transform_5, window_bounds = array<i64: 16, 128>}]} {
    %c0_i32 = arith.constant 0 : i32
    %0 = arith.cmpi eq, %arg1, %c0_i32 : i32
    %1 = arith.extui %0 : i1 to i32
    %c0_i32_0 = arith.constant 0 : i32
    %2 = arith.cmpi ne, %1, %c0_i32_0 : i32
    scf.if %2 {
      %c0_10 = arith.constant 0 : index
      %c0_11 = arith.constant 0 : index
      %12 = vector.load %arg4[%c0_10, %c0_11] : memref<16x128xbf16, #tpu.memory_space<vmem>>, vector<16x128xbf16>
      %c0_12 = arith.constant 0 : index
      %c0_13 = arith.constant 0 : index
      %13 = vector.load %arg5[%c0_12, %c0_13] : memref<128x128xbf16, #tpu.memory_space<vmem>>, vector<128x128xbf16>
      %cst_14 = arith.constant dense<0.000000e+00> : vector<16x128xf32>
      %14 = tpu.matmul %12, %13, %cst_14 {dimension_numbers = #tpu.dot_dimension_numbers<[1], [0], [0], [1], [0, 0, 1, 1], [], []>} : vector<16x128xbf16>, vector<128x128xbf16>, vector<16x128xf32> -> vector<16x128xf32>
      %c0_15 = arith.constant 0 : index
      %c0_16 = arith.constant 0 : index
      %15 = vector.load %arg8[%c0_15, %c0_16] : memref<16x128xf32, #tpu.memory_space<vmem>>, vector<16x128xf32>
      tpu.vector_store %arg8[%c0_15, %c0_16], %14 {strides = array<i32>} : memref<16x128xf32, #tpu.memory_space<vmem>>, vector<16x128xf32>,
    } else {
    }
    %c0 = arith.constant 0 : index
    %c0_1 = arith.constant 0 : index
    %3 = vector.load %arg8[%c0, %c0_1] : memref<16x128xf32, #tpu.memory_space<vmem>>, vector<16x128xf32>
    %c0_2 = arith.constant 0 : index
    %c0_3 = arith.constant 0 : index
    %4 = vector.load %arg2[%c0_2, %c0_3] : memref<16x128xbf16, #tpu.memory_space<vmem>>, vector<16x128xbf16>
    %c0_4 = arith.constant 0 : index
    %c0_5 = arith.constant 0 : index
    %5 = vector.load %arg3[%c0_4, %c0_5] : memref<128x128xbf16, #tpu.memory_space<vmem>>, vector<128x128xbf16>
    %cst = arith.constant dense<0.000000e+00> : vector<16x128xf32>
    %6 = tpu.matmul %4, %5, %cst {dimension_numbers = #tpu.dot_dimension_numbers<[1], [0], [0], [1], [0, 0, 1, 1], [], []>} : vector<16x128xbf16>, vector<128x128xbf16>, vector<16x128xf32> -> vector<16x128xf32>
    %7 = arith.addf %3, %6 : vector<16x128xf32>
    %c0_6 = arith.constant 0 : index
    %c0_7 = arith.constant 0 : index
    %8 = vector.load %arg8[%c0_6, %c0_7] : memref<16x128xf32, #tpu.memory_space<vmem>>, vector<16x128xf32>
    tpu.vector_store %arg8[%c0_6, %c0_7], %7 {strides = array<i32>} : memref<16x128xf32, #tpu.memory_space<vmem>>, vector<16x128xf32>,
    %c0_i32_8 = arith.constant 0 : i32
    %9 = arith.cmpi eq, %arg1, %c0_i32_8 : i32
    %10 = arith.extui %9 : i1 to i32
    %c0_i32_9 = arith.constant 0 : i32
    %11 = arith.cmpi ne, %10, %c0_i32_9 : i32
    scf.if %11 {
      %c0_10 = arith.constant 0 : index
      %c0_11 = arith.constant 0 : index
      %12 = vector.load %arg8[%c0_10, %c0_11] : memref<16x128xf32, #tpu.memory_space<vmem>>, vector<16x128xf32>
      %c0_12 = arith.constant 0 : index
      %c0_13 = arith.constant 0 : index
      %13 = vector.load %arg6[%c0_12, %c0_13] : memref<1x128xf32, #tpu.memory_space<vmem>>, vector<1x128xf32>
      %14 = vector.broadcast %13 : vector<1x128xf32> to vector<16x128xf32>
      %15 = arith.addf %12, %14 : vector<16x128xf32>
      %cst_14 = arith.constant 0.000000e+00 : f32
      %16 = vector.broadcast %cst_14 : f32 to vector<16x128xf32>
      %17 = arith.maximumf %15, %16 : vector<16x128xf32>
      %18 = arith.truncf %17 : vector<16x128xf32> to vector<16x128xbf16>
      %c0_15 = arith.constant 0 : index
      %c0_16 = arith.constant 0 : index
      %19 = vector.load %arg7[%c0_15, %c0_16] : memref<16x128xbf16, #tpu.memory_space<vmem>>, vector<16x128xbf16>
      tpu.vector_store %arg7[%c0_15, %c0_16], %18 {strides = array<i32>} : memref<16x128xbf16, #tpu.memory_space<vmem>>, vector<16x128xbf16>,
    } else {
    }
    return
  }
  func.func @transform_0(%arg0: i32, %arg1: i32) -> (i32, i32) {
    %c0_i32 = arith.constant 0 : i32
    return %arg0, %arg1 : i32, i32
  }
  func.func @transform_1(%arg0: i32, %arg1: i32) -> (i32, i32) {
    %c0_i32 = arith.constant 0 : i32
    %c0_i32_0 = arith.constant 0 : i32
    return %arg1, %c0_i32 : i32, i32
  }
  func.func @transform_2(%arg0: i32, %arg1: i32) -> (i32, i32) {
    %c0_i32 = arith.constant 0 : i32
    %c0_i32_0 = arith.constant 0 : i32
    return %arg0, %c0_i32 : i32, i32
  }
  func.func @transform_3(%arg0: i32, %arg1: i32) -> (i32, i32) {
    %c0_i32 = arith.constant 0 : i32
    %c0_i32_0 = arith.constant 0 : i32
    %c0_i32_1 = arith.constant 0 : i32
    return %c0_i32, %c0_i32_0 : i32, i32
  }
  func.func @transform_4(%arg0: i32, %arg1: i32) -> (i32, i32) {
    %c0_i32 = arith.constant 0 : i32
    %c0_i32_0 = arith.constant 0 : i32
    %c0_i32_1 = arith.constant 0 : i32
    return %c0_i32, %c0_i32_0 : i32, i32
  }
  func.func @transform_5(%arg0: i32, %arg1: i32) -> (i32, i32) {
    %c0_i32 = arith.constant 0 : i32
    %c0_i32_0 = arith.constant 0 : i32
    return %arg0, %c0_i32 : i32, i32
  }
}

module attributes {stable_mosaic.version = 11 : i64} {
  func.func @_sage_layer_kernel(%arg0: i32, %arg1: i32, %arg2: memref<16x128xbf16, #tpu.memory_space<vmem>>, %arg3: memref<128x128xbf16, #tpu.memory_space<vmem>>, %arg4: memref<16x128xbf16, #tpu.memory_space<vmem>>, %arg5: memref<128x128xbf16, #tpu.memory_space<vmem>>, %arg6: memref<1x128xf32, #tpu.memory_space<vmem>>, %arg7: memref<16x128xf32, #tpu.memory_space<vmem>>, %arg8: memref<16x128xf32, #tpu.memory_space<vmem>>) attributes {dimension_semantics = [#tpu.dimension_semantics<parallel>, #tpu.dimension_semantics<arbitrary>], iteration_bounds = array<i64: 1, 1>, scalar_prefetch = 0 : i64, scratch_operands = 1 : i64, tpu.core_type = #tpu.core_type<tc>, window_params = [{transform_indices = @transform_0, window_bounds = array<i64: 16, 128>}, {transform_indices = @transform_1, window_bounds = array<i64: 128, 128>}, {transform_indices = @transform_2, window_bounds = array<i64: 16, 128>}, {pipeline_mode = #tpu.pipeline_mode<synchronous>, transform_indices = @transform_3, window_bounds = array<i64: 128, 128>}, {pipeline_mode = #tpu.pipeline_mode<synchronous>, transform_indices = @transform_4, window_bounds = array<i64: 1, 128>}, {transform_indices = @transform_5, window_bounds = array<i64: 16, 128>}]} {
    %c0_i32 = arith.constant 0 : i32
    %0 = arith.cmpi eq, %arg1, %c0_i32 : i32
    %1 = arith.extui %0 : i1 to i32
    %c0_i32_0 = arith.constant 0 : i32
    %2 = arith.cmpi ne, %1, %c0_i32_0 : i32
    scf.if %2 {
      %c0_10 = arith.constant 0 : index
      %c0_11 = arith.constant 0 : index
      %12 = vector.load %arg4[%c0_10, %c0_11] : memref<16x128xbf16, #tpu.memory_space<vmem>>, vector<16x128xbf16>
      %c0_12 = arith.constant 0 : index
      %c0_13 = arith.constant 0 : index
      %13 = vector.load %arg5[%c0_12, %c0_13] : memref<128x128xbf16, #tpu.memory_space<vmem>>, vector<128x128xbf16>
      %cst_14 = arith.constant dense<0.000000e+00> : vector<16x128xf32>
      %14 = tpu.matmul %12, %13, %cst_14 {dimension_numbers = #tpu.dot_dimension_numbers<[1], [0], [0], [1], [0, 0, 1, 1], [], []>} : vector<16x128xbf16>, vector<128x128xbf16>, vector<16x128xf32> -> vector<16x128xf32>
      %c0_15 = arith.constant 0 : index
      %c0_16 = arith.constant 0 : index
      %15 = vector.load %arg8[%c0_15, %c0_16] : memref<16x128xf32, #tpu.memory_space<vmem>>, vector<16x128xf32>
      tpu.vector_store %arg8[%c0_15, %c0_16], %14 {strides = array<i32>} : memref<16x128xf32, #tpu.memory_space<vmem>>, vector<16x128xf32>,
    } else {
    }
    %c0 = arith.constant 0 : index
    %c0_1 = arith.constant 0 : index
    %3 = vector.load %arg8[%c0, %c0_1] : memref<16x128xf32, #tpu.memory_space<vmem>>, vector<16x128xf32>
    %c0_2 = arith.constant 0 : index
    %c0_3 = arith.constant 0 : index
    %4 = vector.load %arg2[%c0_2, %c0_3] : memref<16x128xbf16, #tpu.memory_space<vmem>>, vector<16x128xbf16>
    %c0_4 = arith.constant 0 : index
    %c0_5 = arith.constant 0 : index
    %5 = vector.load %arg3[%c0_4, %c0_5] : memref<128x128xbf16, #tpu.memory_space<vmem>>, vector<128x128xbf16>
    %cst = arith.constant dense<0.000000e+00> : vector<16x128xf32>
    %6 = tpu.matmul %4, %5, %cst {dimension_numbers = #tpu.dot_dimension_numbers<[1], [0], [0], [1], [0, 0, 1, 1], [], []>} : vector<16x128xbf16>, vector<128x128xbf16>, vector<16x128xf32> -> vector<16x128xf32>
    %7 = arith.addf %3, %6 : vector<16x128xf32>
    %c0_6 = arith.constant 0 : index
    %c0_7 = arith.constant 0 : index
    %8 = vector.load %arg8[%c0_6, %c0_7] : memref<16x128xf32, #tpu.memory_space<vmem>>, vector<16x128xf32>
    tpu.vector_store %arg8[%c0_6, %c0_7], %7 {strides = array<i32>} : memref<16x128xf32, #tpu.memory_space<vmem>>, vector<16x128xf32>,
    %c0_i32_8 = arith.constant 0 : i32
    %9 = arith.cmpi eq, %arg1, %c0_i32_8 : i32
    %10 = arith.extui %9 : i1 to i32
    %c0_i32_9 = arith.constant 0 : i32
    %11 = arith.cmpi ne, %10, %c0_i32_9 : i32
    scf.if %11 {
      %c0_10 = arith.constant 0 : index
      %c0_11 = arith.constant 0 : index
      %12 = vector.load %arg8[%c0_10, %c0_11] : memref<16x128xf32, #tpu.memory_space<vmem>>, vector<16x128xf32>
      %c0_12 = arith.constant 0 : index
      %c0_13 = arith.constant 0 : index
      %13 = vector.load %arg6[%c0_12, %c0_13] : memref<1x128xf32, #tpu.memory_space<vmem>>, vector<1x128xf32>
      %14 = vector.broadcast %13 : vector<1x128xf32> to vector<16x128xf32>
      %15 = arith.addf %12, %14 : vector<16x128xf32>
      %c0_14 = arith.constant 0 : index
      %c0_15 = arith.constant 0 : index
      %16 = vector.load %arg7[%c0_14, %c0_15] : memref<16x128xf32, #tpu.memory_space<vmem>>, vector<16x128xf32>
      tpu.vector_store %arg7[%c0_14, %c0_15], %15 {strides = array<i32>} : memref<16x128xf32, #tpu.memory_space<vmem>>, vector<16x128xf32>,
    } else {
    }
    return
  }
  func.func @transform_0(%arg0: i32, %arg1: i32) -> (i32, i32) {
    %c0_i32 = arith.constant 0 : i32
    return %arg0, %arg1 : i32, i32
  }
  func.func @transform_1(%arg0: i32, %arg1: i32) -> (i32, i32) {
    %c0_i32 = arith.constant 0 : i32
    %c0_i32_0 = arith.constant 0 : i32
    return %arg1, %c0_i32 : i32, i32
  }
  func.func @transform_2(%arg0: i32, %arg1: i32) -> (i32, i32) {
    %c0_i32 = arith.constant 0 : i32
    %c0_i32_0 = arith.constant 0 : i32
    return %arg0, %c0_i32 : i32, i32
  }
  func.func @transform_3(%arg0: i32, %arg1: i32) -> (i32, i32) {
    %c0_i32 = arith.constant 0 : i32
    %c0_i32_0 = arith.constant 0 : i32
    %c0_i32_1 = arith.constant 0 : i32
    return %c0_i32, %c0_i32_0 : i32, i32
  }
  func.func @transform_4(%arg0: i32, %arg1: i32) -> (i32, i32) {
    %c0_i32 = arith.constant 0 : i32
    %c0_i32_0 = arith.constant 0 : i32
    %c0_i32_1 = arith.constant 0 : i32
    return %c0_i32, %c0_i32_0 : i32, i32
  }
  func.func @transform_5(%arg0: i32, %arg1: i32) -> (i32, i32) {
    %c0_i32 = arith.constant 0 : i32
    %c0_i32_0 = arith.constant 0 : i32
    return %arg0, %c0_i32 : i32, i32
  }
}

</mosaic_0001>

<bundles_post_ra>
// kernel: sage_forward.4
= control target key start
LH: loop header
LB: loop body
LE: loop exit
PB: predicated region body
PF: predicated region fallthrough
CT: control target
= control target key end

     0   :  { %s583_s1 = inlined_call_operand.vmem [shape: bf16[128,128], index: 1, kind: input, shape index: {}]   ;;  %s584_s0 = inlined_call_operand.vmem [shape: bf16[128,128], index: 0, kind: input, shape index: {}]   ;;  %s585_s2 = inlined_call_operand.vmem [shape: bf16[128,128], index: 2, kind: output, shape index: {}]  }
   0x1   :  { %v480_v0 = vld [vmem:[%s583_s1] sm:$0xff]   ;;  %v481_v1 = vld [vmem:[%s583_s1 + $0x8] sm:$0xff]   ;;  %v482_v2 = vld [vmem:[%s583_s1 + $0x10] sm:$0xff]  }
   0x2   :  { %432 = vmatprep.subr.bf16.mxu0 %v480_v0  ;;  %464 = vmatprep.subr.bf16.mxu1 %v480_v0  ;;  %v483_v3 = vld [vmem:[%s583_s1 + $0x18] sm:$0xff]   ;;  %v488_v4 = vld [vmem:[%s584_s0] sm:$0xff]   ;;  %v485_v7 = vld [vmem:[%s583_s1 + $0x28] sm:$0xff]  }
   0x3   :  { %433 = vmatpush3.bf16.msra.mxu0 %v480_v0  ;;  %472 = vmatpush3.bf16.msra.mxu1 %v480_v0  ;;  %v489_v5 = vld [vmem:[%s584_s0 + $0x20] sm:$0xff]   ;;  %v486_v8 = vld [vmem:[%s583_s1 + $0x30] sm:$0xff]   ;;  %v487_v9 = vld [vmem:[%s583_s1 + $0x38] sm:$0xff]  }
   0x4   :  { %434 = vmatprep.subr.bf16.mxu0 %v481_v1  ;;  %465 = vmatprep.subr.bf16.mxu1 %v481_v1  ;;  %v484_v6 = vld [vmem:[%s583_s1 + $0x20] sm:$0xff]   ;;  %v490_v10 = vld [vmem:[%s584_s0 + $0x8] sm:$0xff]   ;;  %v492_v12 = vld [vmem:[%s584_s0 + $0x10] sm:$0xff]  }
   0x5   :  { %448 = vmatprep.mubr.bf16.mxu0 %v488_v4  ;;  %456 = vmatprep.mubr.bf16.mxu1 %v489_v5  ;;  %v491_v11 = vld [vmem:[%s584_s0 + $0x28] sm:$0xff]   ;;  %v493_v13 = vld [vmem:[%s584_s0 + $0x30] sm:$0xff]   ;;  %v494_v14 = vld [vmem:[%s584_s0 + $0x18] sm:$0xff]  }
   0x6   :  { %v495_v15 = vld [vmem:[%s584_s0 + $0x38] sm:$0xff]  }
   0x7   :  { %435 = vmatpush3.bf16.msra.mxu0 %v481_v1  ;;  %473 = vmatpush3.bf16.msra.mxu1 %v481_v1 }
   0x8   :  { %436 = vmatprep.subr.bf16.mxu0 %v482_v2  ;;  %466 = vmatprep.subr.bf16.mxu1 %v482_v2 }
   0xb   :  { %437 = vmatpush3.bf16.msra.mxu0 %v482_v2  ;;  %474 = vmatpush3.bf16.msra.mxu1 %v482_v2 }
   0xc   :  { %438 = vmatprep.subr.bf16.mxu0 %v483_v3  ;;  %467 = vmatprep.subr.bf16.mxu1 %v483_v3 }
   0xf   :  { %439 = vmatpush3.bf16.msra.mxu0 %v483_v3  ;;  %475 = vmatpush3.bf16.msra.mxu1 %v483_v3 }
  0x10   :  { %440 = vmatprep.subr.bf16.mxu0 %v484_v6  ;;  %468 = vmatprep.subr.bf16.mxu1 %v484_v6 }
  0x13   :  { %441 = vmatpush3.bf16.msra.mxu0 %v484_v6  ;;  %476 = vmatpush3.bf16.msra.mxu1 %v484_v6 }
  0x14   :  { %442 = vmatprep.subr.bf16.mxu0 %v485_v7  ;;  %469 = vmatprep.subr.bf16.mxu1 %v485_v7 }
  0x17   :  { %443 = vmatpush3.bf16.msra.mxu0 %v485_v7  ;;  %477 = vmatpush3.bf16.msra.mxu1 %v485_v7 }
  0x18   :  { %444 = vmatprep.subr.bf16.mxu0 %v486_v8  ;;  %470 = vmatprep.subr.bf16.mxu1 %v486_v8 }
  0x1b   :  { %445 = vmatpush3.bf16.msra.mxu0 %v486_v8  ;;  %478 = vmatpush3.bf16.msra.mxu1 %v486_v8 }
  0x1c   :  { %446 = vmatprep.subr.bf16.mxu0 %v487_v9  ;;  %471 = vmatprep.subr.bf16.mxu1 %v487_v9 }
  0x1f   :  { %447 = vmatpush3.bf16.msra.mxu0 %v487_v9  ;;  %479 = vmatpush3.bf16.msra.mxu1 %v487_v9 }
  0x22   :  { %449 = vmatmul.mubr.bf16.vlgmr.msra.gmra.mrb[0].mxu0 %v490_v10  ;;  %457 = vmatmul.mubr.bf16.vlgmr.msra.gmra.mrb[0].mxu1 %v491_v11 }
  0x23   :  { %452 = vmatprep.mubr.bf16.mxu0 %v492_v12  ;;  %460 = vmatprep.mubr.bf16.mxu1 %v493_v13 }
  0x2a   :  { %453 = vmatmul.mubr.bf16.gmra.mrb[4].mxu0 %v494_v14  ;;  %461 = vmatmul.mubr.bf16.gmra.mrb[4].mxu1 %v495_v15 }
  0xf5   :  { %v450_v16 = vpop.f32.mrb[0].mxu0  ;;  %v458_v17 = vpop.f32.mrb[0].mxu1 }
  0xf6   :  { %v174_v18 = vpop.f32.mrb[1].mxu0  ;;  %v206_v19 = vpop.f32.mrb[1].mxu1 }
  0xf7   :  { %v451_v20 = vpop.f32.mrb[2].mxu0  ;;  %v459_v21 = vpop.f32.mrb[2].mxu1 }
  0xf8   :  { %v377_v22 = vpack.c.bf16 %v451_v20, %v450_v16  ;;  %v397_v23 = vpack.c.bf16 %v459_v21, %v458_v17  ;;  %v177_v24 = vpop.f32.mrb[3].mxu0  ;;  %v209_v25 = vpop.f32.mrb[3].mxu1 }
  0xf9   :  { %v372_v26 = vpack.c.bf16 %v177_v24, %v174_v18  ;;  %v392_v27 = vpack.c.bf16 %v209_v25, %v206_v19 }
  0xfa   :  { %409 = vst [vmem:[%s585_s2 + $0x8] sm:$0xff] %v377_v22   ;;  %413 = vst [vmem:[%s585_s2 + $0x28] sm:$0xff] %v397_v23  }
  0xfb   :  { %373 = vst [vmem:[%s585_s2] sm:$0xff] %v372_v26   ;;  %412 = vst [vmem:[%s585_s2 + $0x20] sm:$0xff] %v392_v27  }
  0xfd   :  { %v454_v28 = vpop.f32.mrb[4].mxu0  ;;  %v462_v29 = vpop.f32.mrb[4].mxu1 }
  0xfe   :  { %v190_v30 = vpop.f32.mrb[5].mxu0  ;;  %v222_v31 = vpop.f32.mrb[5].mxu1 }
  0xff   :  { %v455_v32 = vpop.f32.mrb[6].mxu0  ;;  %v463_v33 = vpop.f32.mrb[6].mxu1 }
 0x100   :  { %v387_v34 = vpack.c.bf16 %v455_v32, %v454_v28  ;;  %v407_v35 = vpack.c.bf16 %v463_v33, %v462_v29  ;;  %v193_v36 = vpop.f32.mrb[7].mxu0  ;;  %v225_v37 = vpop.f32.mrb[7].mxu1 }
 0x101   :  { %v382_v38 = vpack.c.bf16 %v193_v36, %v190_v30  ;;  %v402_v39 = vpack.c.bf16 %v225_v37, %v222_v31 }
 0x102   :  { %411 = vst [vmem:[%s585_s2 + $0x18] sm:$0xff] %v387_v34   ;;  %415 = vst [vmem:[%s585_s2 + $0x38] sm:$0xff] %v407_v35  }
 0x103   :  { %410 = vst [vmem:[%s585_s2 + $0x10] sm:$0xff] %v382_v38   ;;  %414 = vst [vmem:[%s585_s2 + $0x30] sm:$0xff] %v402_v39  }

// kernel: sage_forward.5
= control target key start
LH: loop header
LB: loop body
LE: loop exit
PB: predicated region body
PF: predicated region fallthrough
CT: control target
= control target key end

     0   :  { %s855_s18 = smov 0   ;;  %s857_s19 = smov 0   ;;  %s949_s0 = inlined_call_operand.vmem [shape: bf16[32,128], index: 0, kind: input, shape index: {}]   ;;  %s950_s1 = inlined_call_operand.vmem [shape: bf16[128,128], index: 1, kind: input, shape index: {}]   ;;  %s951_s2 = inlined_call_operand.vmem [shape: bf16[128,128], index: 2, kind: input, shape index: {}]   ;;  %s952_s3 = inlined_call_operand.vmem [shape: bf16[128,128], index: 3, kind: input, shape index: {}]   ;;  %s953_s4 = inlined_call_operand.vmem [shape: f32[1,128], index: 4, kind: input, shape index: {}]   ;;  %s954_s5 = inlined_call_operand.vmem [shape: bf16[32,128], index: 5, kind: output, shape index: {}]  }
   0x1   :  { %s859_s20 = smov 0  }
   0x2 LB: > { %s27_s21 = sadd.s32 1, %s817_s19  ;;  %p660_p0 = scmp.ge.s32.totalorder %s821_s20, 1  ;;  %s821_s20 = sphi %s859_s20, %s15_s20   ;;  %s817_s19 = sphi %s857_s19, %s956_s19   ;;  %s813_s18 = sphi %s855_s18, %s955_s18  }
   0x3   : > { %p29_p1 = scmp.ge.s32.totalorder %s27_s21, 2  ;;  %p227_p2 = scmp.lt.s32.totalorder %s821_s20, 3 }
   0x5   : > { %s958_s21 = smov (%p29_p1, %s27_s21), 0  ;;  %p228_p3 = pnand %p660_p0, %p227_p2 }
   0x6   : > { %v781_v0 = vld [vmem:[%s952_s3] sm:$0xff] (!%p228_p3)   ;;  %v823_v1 = vmov (!%p228_p3), 0.0   ;;  %v783_v3 = vld [vmem:[%s952_s3 + $0x8] sm:$0xff] (!%p228_p3)   ;;  %vm824_vm0 = vmmov (!%p228_p3), 0   ;;  %s661_s28 = sshll.u32 (!%p228_p3), %s813_s18, 1  ;;  %v785_v5 = vld [vmem:[%s952_s3 + $0x10] sm:$0xff] (!%p228_p3)  }
   0x7   : > { %231 = sbr.rel (%p228_p3) target bundleno = 263 (0x107), region = 40  ;;  %715 = vmatprep.subr.bf16.mxu0 (!%p228_p3), %v823_v1  ;;  %735 = vmatprep.subr.bf16.mxu1 (!%p228_p3), %v823_v1  ;;  %v782_v2 = vld [vmem:[%s950_s1] sm:$0xff] (!%p228_p3)   ;;  %v784_v4 = vld [vmem:[%s950_s1 + $0x8] sm:$0xff] (!%p228_p3)   ;;  %p284_p4 = scmp.lt.s32.totalorder (!%p228_p3), %s661_s28, 15  ;;  %v786_v6 = vld [vmem:[%s950_s1 + $0x10] sm:$0xff] (!%p228_p3)  }
   0x8   : > { %716 = vmatpush3.bf16.msra.mxu0 (!%p228_p3), %v781_v0  ;;  %731 = vmatprep.mubr.msk.bf16.mxu0 (!%p228_p3), %vm824_vm0, %v823_v1  ;;  %p269_p5 = scmp.lt.s32.totalorder (!%p228_p3), %s661_s28, 3  ;;  %v787_v7 = vld [vmem:[%s952_s3 + $0x18] sm:$0xff] (!%p228_p3)   ;;  %v789_v9 = vld [vmem:[%s952_s3 + $0x20] sm:$0xff] (!%p228_p3)   ;;  %v791_v11 = vld [vmem:[%s952_s3 + $0x28] sm:$0xff] (!%p228_p3)  }
   0x9   : > { %736 = vmatpush3.bf16.msra.mxu1 (!%p228_p3), %v782_v2  ;;  %717 = vmatprep.subr.bf16.mxu0 (!%p228_p3), %v823_v1  ;;  %v788_v8 = vld [vmem:[%s950_s1 + $0x18] sm:$0xff] (!%p228_p3)   ;;  %v790_v10 = vld [vmem:[%s950_s1 + $0x20] sm:$0xff] (!%p228_p3)   ;;  %v792_v12 = vld [vmem:[%s950_s1 + $0x28] sm:$0xff] (!%p228_p3)  }
   0xa   : > { %737 = vmatprep.subr.bf16.mxu1 (!%p228_p3), %v823_v1  ;;  %751 = vmatprep.mubr.msk.bf16.mxu1 (!%p228_p3), %vm824_vm0, %v823_v1  ;;  %v793_v13 = vld [vmem:[%s952_s3 + $0x30] sm:$0xff] (!%p228_p3)   ;;  %v795_v15 = vld [vmem:[%s952_s3 + $0x38] sm:$0xff] (!%p228_p3)   ;;  %v685_v21 = vld [vmem:[%s953_s4] ss:$0 sm:$0xff] (!%p228_p3) }
   0xb   : > { %v794_v14 = vld [vmem:[%s950_s1 + $0x30] sm:$0xff] (!%p228_p3)   ;;  %v796_v16 = vld [vmem:[%s950_s1 + $0x38] sm:$0xff] (!%p228_p3)  }
   0xc   : > { %718 = vmatpush3.bf16.msra.mxu0 (!%p228_p3), %v783_v3 }
   0xd   : > { %738 = vmatpush3.bf16.msra.mxu1 (!%p228_p3), %v784_v4  ;;  %719 = vmatprep.subr.bf16.mxu0 (!%p228_p3), %v823_v1 }
   0xe   : > { %739 = vmatprep.subr.bf16.mxu1 %v823_v1  ;;  %s285_s10 = scalar_select %p284_p4, %s661_s28, 15 }
   0xf   : > { %s960_s28 = smov (!%p269_p5, %s661_s28), 3 }
  0x10   : > { %720 = vmatpush3.bf16.msra.mxu0 %v785_v5  ;;  %s664_s15 = sshll.u32 %s285_s10, 2  ;;  %s662_s16 = sshll.u32 %s960_s28, 2 }
  0x11   : > { %740 = vmatpush3.bf16.msra.mxu1 %v786_v6  ;;  %721 = vmatprep.subr.bf16.mxu0 %v823_v1  ;;  %s287_s26 = scalar_lea.vmem %s951_s2, %s664_s15  ;;  %s275_s30 = scalar_lea.vmem %s949_s0, %s662_s16 }
  0x12   : > { %741 = vmatprep.subr.bf16.mxu1 %v823_v1  ;;  %v797_v17 = vld [vmem:[%s287_s26] sm:$0xff]   ;;  %s293_s26 = scalar_lea.vmem %s954_s5, %s662_s16 }
  0x13   : > { %v798_v18 = vld [vmem:[%s275_s30] sm:$0xff]  }
  0x14   : > { %722 = vmatpush3.bf16.msra.mxu0 %v787_v7 }
  0x15   : > { %742 = vmatpush3.bf16.msra.mxu1 %v788_v8  ;;  %723 = vmatprep.subr.bf16.mxu0 %v823_v1 }
  0x16   : > { %743 = vmatprep.subr.bf16.mxu1 %v823_v1 }
  0x18   : > { %724 = vmatpush3.bf16.msra.mxu0 %v789_v9 }
  0x19   : > { %744 = vmatpush3.bf16.msra.mxu1 %v790_v10  ;;  %725 = vmatprep.subr.bf16.mxu0 %v823_v1 }
  0x1a   : > { %745 = vmatprep.subr.bf16.mxu1 %v823_v1 }
  0x1c   : > { %726 = vmatpush3.bf16.msra.mxu0 %v791_v11 }
  0x1d   : > { %746 = vmatpush3.bf16.msra.mxu1 %v792_v12  ;;  %727 = vmatprep.subr.bf16.mxu0 %v823_v1 }
  0x1e   : > { %747 = vmatprep.subr.bf16.mxu1 %v823_v1 }
  0x20   : > { %728 = vmatpush3.bf16.msra.mxu0 %v793_v13 }
  0x21   : > { %748 = vmatpush3.bf16.msra.mxu1 %v794_v14  ;;  %729 = vmatprep.subr.bf16.mxu0 %v823_v1 }
  0x22   : > { %749 = vmatprep.subr.bf16.mxu1 %v823_v1 }
  0x24   : > { %730 = vmatpush3.bf16.msra.mxu0 %v795_v15 }
  0x25   : > { %750 = vmatpush3.bf16.msra.mxu1 %v796_v16 }
  0x27   : > { %732 = vmatmul.mubr.bf16.vlgmr.msra.gmra.mrb[0].mxu0 %v797_v17 }
  0x28   : > { %752 = vmatmul.mubr.bf16.vlgmr.msra.gmra.mrb[0].mxu1 %v798_v18 }
  0xfa   : > { %v406_v19 = vpop.f32.mrb[0].mxu0 }
  0xfb   : > { %v523_v20 = vpop.f32.mrb[0].mxu1  ;;  %v733_v22 = vpop.f32.mrb[1].mxu0 }
  0xfc   : > { %v530_v23 = vadd.f32 %v523_v20, %v406_v19  ;;  %v753_v24 = vpop.f32.mrb[1].mxu1  ;;  %v409_v25 = vpop.f32.mrb[2].mxu0 }
  0xfd   : > { %v526_v26 = vpop.f32.mrb[2].mxu1  ;;  %v734_v27 = vpop.f32.mrb[3].mxu0 }
  0xfe   : > { %v546_v28 = vadd.f32 %v685_v21, %v530_v23  ;;  %v531_v29 = vadd.f32 %v526_v26, %v409_v25  ;;  %v754_v30 = vpop.f32.mrb[3].mxu1 }
 0x100   : > { %v547_v31 = vadd.f32 %v685_v21, %v531_v29  ;;  %v548_v32 = vmax.f32 %v546_v28, 0.0 }
 0x102   : > { %v549_v33 = vmax.f32 %v547_v31, 0.0 }
 0x104   : > { %v695_v34 = vpack.c.bf16 %v549_v33, %v548_v32 }
 0x106   : > { %696 = vst [vmem:[%s293_s26] sm:$0xff] %v695_v34  }
 0x107 PF: > { %s15_s20 = sadd.s32 1, %s821_s20   ;;  %s955_s18 = smov %s817_s19 }
 0x108   : > { %p12_p6 = scmp.ge.s32.totalorder %s15_s20, 4   ;;  %s956_s19 = smov %s958_s21 }
 0x10a   :  { %14 = sbr.rel (!%p12_p6) target bundleno = 2 (0x2), region = 84 }

// kernel: sage_forward.7
= control target key start
LH: loop header
LB: loop body
LE: loop exit
PB: predicated region body
PF: predicated region fallthrough
CT: control target
= control target key end

     0   :  { %v416_v1 = vmov 0.0   ;;  %vm417_vm0 = vmmov 0   ;;  %s520_s0 = inlined_call_operand.vmem [shape: bf16[16,128], index: 0, kind: input, shape index: {}]   ;;  %s521_s1 = inlined_call_operand.vmem [shape: bf16[128,128], index: 1, kind: input, shape index: {}]   ;;  %s522_s2 = inlined_call_operand.vmem [shape: bf16[128,128], index: 2, kind: input, shape index: {}]   ;;  %s523_s3 = inlined_call_operand.vmem [shape: bf16[128,128], index: 3, kind: input, shape index: {}]   ;;  %s524_s4 = inlined_call_operand.vmem [shape: f32[1,128], index: 4, kind: input, shape index: {}]   ;;  %s525_s5 = inlined_call_operand.hbm [shape: f32[16,128], index: 5, kind: output, shape index: {}]  }
   0x1   :  { %v374_v0 = vld [vmem:[%s523_s3] sm:$0xff]   ;;  %329 = vmatprep.subr.bf16.mxu0 %v416_v1  ;;  %349 = vmatprep.subr.bf16.mxu1 %v416_v1  ;;  %v376_v3 = vld [vmem:[%s523_s3 + $0x8] sm:$0xff]   ;;  %v378_v5 = vld [vmem:[%s523_s3 + $0x10] sm:$0xff]  }
   0x2   :  { %v375_v2 = vld [vmem:[%s521_s1] sm:$0xff]   ;;  %330 = vmatpush3.bf16.msra.mxu0 %v374_v0  ;;  %345 = vmatprep.mubr.msk.bf16.mxu0 %vm417_vm0, %v416_v1  ;;  %v377_v4 = vld [vmem:[%s521_s1 + $0x8] sm:$0xff]   ;;  %v379_v6 = vld [vmem:[%s521_s1 + $0x10] sm:$0xff]  }
   0x3   :  { %350 = vmatpush3.bf16.msra.mxu1 %v375_v2  ;;  %331 = vmatprep.subr.bf16.mxu0 %v416_v1  ;;  %v380_v7 = vld [vmem:[%s523_s3 + $0x18] sm:$0xff]   ;;  %v382_v9 = vld [vmem:[%s523_s3 + $0x20] sm:$0xff]   ;;  %v384_v11 = vld [vmem:[%s523_s3 + $0x28] sm:$0xff]  }
   0x4   :  { %351 = vmatprep.subr.bf16.mxu1 %v416_v1  ;;  %365 = vmatprep.mubr.msk.bf16.mxu1 %vm417_vm0, %v416_v1  ;;  %v381_v8 = vld [vmem:[%s521_s1 + $0x18] sm:$0xff]   ;;  %v383_v10 = vld [vmem:[%s521_s1 + $0x20] sm:$0xff]  }
   0x6   :  { %332 = vmatpush3.bf16.msra.mxu0 %v376_v3 }
   0x7   :  { %352 = vmatpush3.bf16.msra.mxu1 %v377_v4  ;;  %333 = vmatprep.subr.bf16.mxu0 %v416_v1 }
   0x8   :  { %353 = vmatprep.subr.bf16.mxu1 %v416_v1 }
   0xa   :  { %334 = vmatpush3.bf16.msra.mxu0 %v378_v5 }
   0xb   :  { %354 = vmatpush3.bf16.msra.mxu1 %v379_v6  ;;  %335 = vmatprep.subr.bf16.mxu0 %v416_v1 }
   0xc   :  { %355 = vmatprep.subr.bf16.mxu1 %v416_v1 }
   0xe   :  { %336 = vmatpush3.bf16.msra.mxu0 %v380_v7 }
   0xf   :  { %356 = vmatpush3.bf16.msra.mxu1 %v381_v8  ;;  %337 = vmatprep.subr.bf16.mxu0 %v416_v1 }
  0x10   :  { %357 = vmatprep.subr.bf16.mxu1 %v416_v1 }
  0x12   :  { %338 = vmatpush3.bf16.msra.mxu0 %v382_v9 }
  0x13   :  { %10 = vsyncpa [#allocation4], 0  ;;  %358 = vmatpush3.bf16.msra.mxu1 %v383_v10  ;;  %339 = vmatprep.subr.bf16.mxu0 %v416_v1  ;;  %v385_v12 = vld [vmem:[%s521_s1 + $0x28] sm:$0xff]   ;;  %v386_v13 = vld [vmem:[%s523_s3 + $0x30] sm:$0xff]  }
  0x14   :  { %359 = vmatprep.subr.bf16.mxu1 %v416_v1  ;;  %v387_v14 = vld [vmem:[%s521_s1 + $0x30] sm:$0xff]   ;;  %v388_v15 = vld [vmem:[%s523_s3 + $0x38] sm:$0xff]   ;;  %v390_v17 = vld [vmem:[%s522_s2] sm:$0xff]  }
  0x15   :  { %v389_v16 = vld [vmem:[%s521_s1 + $0x38] sm:$0xff]   ;;  %v391_v18 = vld [vmem:[%s520_s0] sm:$0xff]   ;;  %s418_s1 = smov [#allocation3]  }
  0x16   :  { %340 = vmatpush3.bf16.msra.mxu0 %v384_v11  ;;  %v310_v21 = vld [vmem:[%s524_s4] ss:$0 sm:$0xff]  ;;  %s281_s2 = sshll.u32 %s418_s1, 4  ;;  %s282_s2 = int_to_ptr.vmem [resolvable:$true] %s281_s2 }
  0x17   :  { %360 = vmatpush3.bf16.msra.mxu1 %v385_v12  ;;  %341 = vmatprep.subr.bf16.mxu0 %v416_v1  ;;  %s392_s0 = scalar_lea.vmem %s282_s2, 256  ;;  %p397_p1 = scmp.lt.s32.totalorder %s282_s2, %s282_s2 }
  0x18   :  { %361 = vmatprep.subr.bf16.mxu1 %v416_v1  ;;  %p393_p0 = scmp.ne.s32.totalorder %s282_s2, %s392_s0  ;;  %p398_p2 = scmp.lt.s32.totalorder %s392_s0, %s392_s0 }
  0x1a   :  { %342 = vmatpush3.bf16.msra.mxu0 %v386_v13  ;;  %p399_p3 = por %p398_p2, %p397_p1 }
  0x1b   :  { %362 = vmatpush3.bf16.msra.mxu1 %v387_v14  ;;  %343 = vmatprep.subr.bf16.mxu0 %v416_v1 }
  0x1c   :  { %363 = vmatprep.subr.bf16.mxu1 %v416_v1  ;;  %p400_p4 = pnand %p399_p3, %p393_p0 }
  0x1e   :  { %344 = vmatpush3.bf16.msra.mxu0 %v388_v15 }
  0x1f   :  { %364 = vmatpush3.bf16.msra.mxu1 %v389_v16 }
  0x21   :  { %346 = vmatmul.mubr.bf16.vlgmr.msra.gmra.mrb[0].mxu0 %v390_v17 }
  0x22   :  { %366 = vmatmul.mubr.bf16.vlgmr.msra.gmra.mrb[0].mxu1 %v391_v18 }
  0xf4   :  { %v132_v19 = vpop.f32.mrb[0].mxu0 }
  0xf5   :  { %v249_v20 = vpop.f32.mrb[0].mxu1  ;;  %v347_v22 = vpop.f32.mrb[1].mxu0 }
  0xf6   :  { %v256_v23 = vadd.f32 %v249_v20, %v132_v19  ;;  %v367_v24 = vpop.f32.mrb[1].mxu1  ;;  %v135_v25 = vpop.f32.mrb[2].mxu0 }
  0xf7   :  { %v252_v26 = vpop.f32.mrb[2].mxu1  ;;  %v348_v27 = vpop.f32.mrb[3].mxu0 }
  0xf8   :  { %v272_v28 = vadd.f32 %v310_v21, %v256_v23  ;;  %v257_v29 = vadd.f32 %v252_v26, %v135_v25  ;;  %v368_v30 = vpop.f32.mrb[3].mxu1 }
  0xfa   :  { %274 = vst [vmem:[#allocation3] sm:$0xff] %v272_v28  ;;  %v273_v31 = vadd.f32 %v310_v21, %v257_v29 }
  0xfc   :  { %275 = vst [vmem:[#allocation3 + $0x8] sm:$0xff] %v273_v31 }
  0xfd   :  { %403 = shalt.err (!%p400_p4)
}
  0xfe   :  { %s404_s6 = scalar_lea.hbm %s525_s5, 256 }
  0xff   :  { %p405_p5 = scmp.ne.s32.totalorder %s525_s5, %s404_s6  ;;  %p408_p6 = scmp.lt.u32.totalorder %s404_s6, %s525_s5 }
 0x101   :  { %p410_p7 = pnand %p408_p6, %p405_p5 }
 0x103   :  { %413 = shalt.err (!%p410_p7)
}
 0x104   :  { %s419_s11 = smov 128   ;;  %s420_s12 = smov 8  }
 0x105   :  { %287 = dma.vmem_to_hbm [thread:$0]  %s282_s2, 256, %s525_s5, [#allocation4], %s419_s11, %s419_s11, %s420_s12  }
 0x106   :  { %414 = dma.done.wait [#allocation4], 256  }
 0x107   :  { %415 = vsyncadd [#allocation4], 4294967040 }
 0x108   :  { %291 = vsyncpa [#allocation4], 1 }

</bundles_post_ra>
